<compile_context>
chip_gen: v7x
topology: tpu7x:2x2x1
jax: 0.10.0
libtpu: 0.0.40
codegen_flags: <defaults>
</compile_context>

<pallas_src>
import jax
import jax.numpy as jnp
from jax.experimental import pallas as pl
from jax.experimental.pallas import tpu as pltpu


# ----------------------------------------------------------------------------
# helpers
# ----------------------------------------------------------------------------
def _round_up(x, m):
    return ((x + m - 1) // m) * m


def _choose_tb(batch, cap=4096):
    """Batch tile along the lane axis.

    - batch <= 128: single full-dim block (always layout-legal, even if not *128).
    - otherwise: multiple of 128, capped, and split so the grid has >= 2 tiles
      (lets v7x's two TensorCores shard the "parallel" batch axis; the extra grid
      step is noise on v5e/v6e).
    """
    if batch <= 128:
        return batch
    tb = min(cap, _round_up(batch, 128))
    if pl.cdiv(batch, tb) < 2:
        tb = _round_up(pl.cdiv(batch, 2), 128)
    return tb


def _compiler_params():
    # Explicit limit: v5e's scoped-VMEM default is only 16 MiB; with the transposed
    # outputs the per-tile buffers are tiny, so 32 MiB is safe on v5e/v6e/v7x alike.
    return pltpu.CompilerParams(
        dimension_semantics=("parallel",),
        vmem_limit_bytes=32 * 1024 * 1024,
    )


def _resident(w):
    # Constant index_map -> weight/bias stays VMEM-resident across the batch grid.
    return pl.BlockSpec(w.shape, lambda i: (0, 0))


def _batch_spec(channels, tb):
    # (channels, TB) tile marching along the batch (lane) axis.
    return pl.BlockSpec((channels, tb), lambda i: (0, i))


# ----------------------------------------------------------------------------
# Kernel 1: forward()  — fused policy + value branches, transposed layout
#   hT   = relu(W1T @ xT + b1)      W1T: [256, D]   (= [w1p.T ; w1v.T])
#   outT = W2T @ hT + b2            W2T: [C, 256]   rows 0..A-1 policy, row A value
# ----------------------------------------------------------------------------
def _forward_kernel(xT_ref, w1T_ref, b1_ref, w2T_ref, b2_ref, out_ref):
    hT = jnp.maximum(
        jnp.dot(w1T_ref[...], xT_ref[...], preferred_element_type=jnp.float32)
        + b1_ref[...],
        0.0,
    )
    out_ref[...] = (
        jnp.dot(w2T_ref[...], hT, preferred_element_type=jnp.float32) + b2_ref[...]
    )


def forward_pallas(x, packed):
    """Returns (policy_logits [B, A], value_out [B, 1])."""
    w1T, b1, w2T, b2 = packed["fw1T"], packed["fb1T"], packed["fw2T"], packed["fb2T"]
    B, D = x.shape
    A = packed["num_outputs"]
    C = w2T.shape[0]            # round_up(A+1, 8) output channels (sublanes)
    H2 = w1T.shape[0]           # 256 fused hidden

    xT = x.T                    # (D, B): channels on sublanes, batch on lanes
    TB = _choose_tb(B)
    grid = (pl.cdiv(B, TB),)

    cost = pl.CostEstimate(
        flops=2 * B * (D * H2 + H2 * C),
        transcendentals=0,
        bytes_accessed=4 * (D * B + C * B + H2 * (D + 1) + C * (H2 + 1)),
    )

    out = pl.pallas_call(
        _forward_kernel,
        out_shape=jax.ShapeDtypeStruct((C, B), jnp.float32),
        grid_spec=pltpu.PrefetchScalarGridSpec(
            num_scalar_prefetch=0,
            grid=grid,
            in_specs=[
                _batch_spec(D, TB),               # xT tile, pipelined over batch
                _resident(w1T), _resident(b1),    # weights resident in VMEM
                _resident(w2T), _resident(b2),
            ],
            out_specs=_batch_spec(C, TB),
        ),
        compiler_params=_compiler_params(),
        cost_estimate=cost,
    )(xT, w1T, b1, w2T, b2)

    policy = out[:A, :].T            # (B, A)
    value = out[A:A + 1, :].T        # (B, 1)
    return policy, value


# ----------------------------------------------------------------------------
# Kernel 2: central_value_function()  — concat removed, transposed layout
#   h1T  = relu(W1oT @ obsT + W1aT @ oppT + b1)     (128, TB)
#   h2T  = relu(W2T @ h1T + b2)                     (64, TB)
#   outT = W3T @ h2T + b3                           (8, TB)   row 0 meaningful
# ----------------------------------------------------------------------------
def _central_vf_kernel(obsT_ref, oppT_ref, w1oT_ref, w1aT_ref, b1_ref,
                       w2T_ref, b2_ref, w3T_ref, b3_ref, out_ref):
    h1 = jnp.maximum(
        jnp.dot(w1oT_ref[...], obsT_ref[...], preferred_element_type=jnp.float32)
        + jnp.dot(w1aT_ref[...], oppT_ref[...], preferred_element_type=jnp.float32)
        + b1_ref[...],
        0.0,
    )
    h2 = jnp.maximum(
        jnp.dot(w2T_ref[...], h1, preferred_element_type=jnp.float32) + b2_ref[...],
        0.0,
    )
    out_ref[...] = (
        jnp.dot(w3T_ref[...], h2, preferred_element_type=jnp.float32) + b3_ref[...]
    )


def central_value_function_pallas(obs, opponent_actions, packed):
    """Returns central value of shape [B] (already squeezed)."""
    w1oT, w1aT, b1 = packed["cw1oT"], packed["cw1aT"], packed["cb1T"]
    w2T, b2, w3T, b3 = packed["cw2T"], packed["cb2T"], packed["cw3T"], packed["cb3T"]
    B, D = obs.shape
    Ao = opponent_actions.shape[1]
    H = w1oT.shape[0]
    H2 = w2T.shape[0]
    C = w3T.shape[0]

    obsT = obs.T
    oppT = opponent_actions.T
    TB = _choose_tb(B)
    grid = (pl.cdiv(B, TB),)

    cost = pl.CostEstimate(
        flops=2 * B * (D * H + Ao * H + H * H2 + H2 * C),
        transcendentals=0,
        bytes_accessed=4 * ((D + Ao + C) * B
                            + H * (D + Ao + 1) + H2 * (H + 1) + C * (H2 + 1)),
    )

    out = pl.pallas_call(
        _central_vf_kernel,
        out_shape=jax.ShapeDtypeStruct((C, B), jnp.float32),
        grid_spec=pltpu.PrefetchScalarGridSpec(
            num_scalar_prefetch=0,
            grid=grid,
            in_specs=[
                _batch_spec(D, TB),               # obsT tile
                _batch_spec(Ao, TB),              # opponent-action tile
                _resident(w1oT), _resident(w1aT), _resident(b1),
                _resident(w2T), _resident(b2), _resident(w3T), _resident(b3),
            ],
            out_specs=_batch_spec(C, TB),
        ),
        compiler_params=_compiler_params(),
        cost_estimate=cost,
    )(obsT, oppT, w1oT, w1aT, b1, w2T, b2, w3T, b3)

    return out[0, :]


# ----------------------------------------------------------------------------
# Kernel 3: fused forward() + central_value_function() — one launch, obs read once
# ----------------------------------------------------------------------------
def _fused_kernel(xT_ref, oppT_ref,
                  fw1T_ref, fb1_ref, fw2T_ref, fb2_ref,
                  cw1oT_ref, cw1aT_ref, cb1_ref, cw2T_ref, cb2_ref, cw3T_ref, cb3_ref,
                  out_fwd_ref, out_cvf_ref):
    # policy + value branches (fused weights), shared obs tile
    hT = jnp.maximum(
        jnp.dot(fw1T_ref[...], xT_ref[...], preferred_element_type=jnp.float32)
        + fb1_ref[...],
        0.0,
    )
    out_fwd_ref[...] = (
        jnp.dot(fw2T_ref[...], hT, preferred_element_type=jnp.float32) + fb2_ref[...]
    )
    # central value branch
    h1 = jnp.maximum(
        jnp.dot(cw1oT_ref[...], xT_ref[...], preferred_element_type=jnp.float32)
        + jnp.dot(cw1aT_ref[...], oppT_ref[...], preferred_element_type=jnp.float32)
        + cb1_ref[...],
        0.0,
    )
    h2 = jnp.maximum(
        jnp.dot(cw2T_ref[...], h1, preferred_element_type=jnp.float32) + cb2_ref[...],
        0.0,
    )
    out_cvf_ref[...] = (
        jnp.dot(cw3T_ref[...], h2, preferred_element_type=jnp.float32) + cb3_ref[...]
    )


def forward_and_central_vf_pallas(x, opponent_actions, packed):
    """Fused entry point. Returns (policy [B, A], value [B, 1], central_vf [B])."""
    fw1T, fb1, fw2T, fb2 = packed["fw1T"], packed["fb1T"], packed["fw2T"], packed["fb2T"]
    cw1oT, cw1aT, cb1 = packed["cw1oT"], packed["cw1aT"], packed["cb1T"]
    cw2T, cb2, cw3T, cb3 = packed["cw2T"], packed["cb2T"], packed["cw3T"], packed["cb3T"]
    B, D = x.shape
    A = packed["num_outputs"]
    Ao = opponent_actions.shape[1]
    Cf = fw2T.shape[0]
    Cc = cw3T.shape[0]
    H2 = fw1T.shape[0]
    H = cw1oT.shape[0]
    Hc2 = cw2T.shape[0]

    xT = x.T
    oppT = opponent_actions.T
    TB = _choose_tb(B)
    grid = (pl.cdiv(B, TB),)

    weights = [fw1T, fb1, fw2T, fb2, cw1oT, cw1aT, cb1, cw2T, cb2, cw3T, cb3]
    w_bytes = 4 * sum(int(w.size) for w in weights)
    cost = pl.CostEstimate(
        flops=2 * B * (D * H2 + H2 * Cf + D * H + Ao * H + H * Hc2 + Hc2 * Cc),
        transcendentals=0,
        bytes_accessed=4 * B * (D + Ao + Cf + Cc) + w_bytes,
    )

    out_fwd, out_cvf = pl.pallas_call(
        _fused_kernel,
        out_shape=(
            jax.ShapeDtypeStruct((Cf, B), jnp.float32),
            jax.ShapeDtypeStruct((Cc, B), jnp.float32),
        ),
        grid_spec=pltpu.PrefetchScalarGridSpec(
            num_scalar_prefetch=0,
            grid=grid,
            in_specs=[
                _batch_spec(D, TB),
                _batch_spec(Ao, TB),
                _resident(fw1T), _resident(fb1), _resident(fw2T), _resident(fb2),
                _resident(cw1oT), _resident(cw1aT), _resident(cb1),
                _resident(cw2T), _resident(cb2), _resident(cw3T), _resident(cb3),
            ],
            out_specs=[_batch_spec(Cf, TB), _batch_spec(Cc, TB)],
        ),
        compiler_params=_compiler_params(),
        cost_estimate=cost,
    )(xT, oppT, fw1T, fb1, fw2T, fb2, cw1oT, cw1aT, cb1, cw2T, cb2, cw3T, cb3)

    policy = out_fwd[:A, :].T
    value = out_fwd[A:A + 1, :].T
    central_vf = out_cvf[0, :]
    return policy, value, central_vf


# ----------------------------------------------------------------------------
# Parameter init (raw, same shapes as nn.Module) + packing into transposed layouts
# ----------------------------------------------------------------------------
def init_params(key, obs_size, num_outputs, opponent_action_dim, hidden=128):
    ks = jax.random.split(key, 14)

    def lin(kw, kb, fan_in, fan_out):
        bound = 1.0 / jnp.sqrt(fan_in)
        w = jax.random.uniform(kw, (fan_in, fan_out), jnp.float32, -bound, bound)
        b = jax.random.uniform(kb, (1, fan_out), jnp.float32, -bound, bound)
        return w, b

    p = {}
    # policy_branch: Linear(obs,128) -> ReLU -> Linear(128, num_outputs)
    p["w1p"], p["b1p"] = lin(ks[0], ks[1], obs_size, hidden)
    p["w2p"], p["b2p"] = lin(ks[2], ks[3], hidden, num_outputs)
    # value_branch: Linear(obs,128) -> ReLU -> Linear(128, 1)
    p["w1v"], p["b1v"] = lin(ks[4], ks[5], obs_size, hidden)
    p["w2v"], p["b2v"] = lin(ks[6], ks[7], hidden, 1)
    # central_vf_branch: Linear(obs+opp,128) -> ReLU -> Linear(128,64) -> ReLU -> Linear(64,1)
    p["cw1"], p["cb1"] = lin(ks[8], ks[9], obs_size + opponent_action_dim, hidden)
    p["cw2"], p["cb2"] = lin(ks[10], ks[11], hidden, 64)
    p["cw3"], p["cb3"] = lin(ks[12], ks[13], 64, 1)
    return p


def pack_params(p, obs_size, num_outputs):
    """Fuse / transpose raw weights into MXU- and lane-friendly layouts (done once)."""
    A = num_outputs
    H = p["w1p"].shape[1]                   # 128
    H2 = p["cw2"].shape[1]                  # 64
    Cf = _round_up(A + 1, 8)                # forward output channels (policy + value)

    packed = {"num_outputs": A}

    # --- forward(): fused first layer [2H, D]; second layer rows packed into [Cf, 2H]
    packed["fw1T"] = jnp.concatenate([p["w1p"].T, p["w1v"].T], axis=0)     # (256, D)
    packed["fb1T"] = jnp.concatenate([p["b1p"], p["b1v"]], axis=1).T       # (256, 1)
    fw2T = jnp.zeros((Cf, 2 * H), jnp.float32)
    fw2T = fw2T.at[:A, :H].set(p["w2p"].T)                                  # policy rows
    fw2T = fw2T.at[A, H:].set(p["w2v"][:, 0])                               # value row
    packed["fw2T"] = fw2T
    fb2T = jnp.zeros((Cf, 1), jnp.float32)
    fb2T = fb2T.at[:A, 0].set(p["b2p"][0])
    fb2T = fb2T.at[A, 0].set(p["b2v"][0, 0])
    packed["fb2T"] = fb2T

    # --- central VF: split concat weight into obs / opponent halves, all transposed
    packed["cw1oT"] = p["cw1"][:obs_size].T                                 # (128, D)
    packed["cw1aT"] = p["cw1"][obs_size:].T                                 # (128, Aopp)
    packed["cb1T"] = p["cb1"].T                                             # (128, 1)
    packed["cw2T"] = p["cw2"].T                                             # (64, 128)
    packed["cb2T"] = p["cb2"].T                                             # (64, 1)
    cw3T = jnp.zeros((8, H2), jnp.float32).at[0, :].set(p["cw3"][:, 0])     # (8, 64)
    packed["cw3T"] = cw3T
    packed["cb3T"] = jnp.zeros((8, 1), jnp.float32).at[0, 0].set(p["cb3"][0, 0])
    return packed


# ----------------------------------------------------------------------------
# Pure-JAX reference (unfused) for correctness checking
# ----------------------------------------------------------------------------
def forward_ref(x, p):
    h_p = jnp.maximum(x @ p["w1p"] + p["b1p"], 0.0)
    pol = h_p @ p["w2p"] + p["b2p"]
    h_v = jnp.maximum(x @ p["w1v"] + p["b1v"], 0.0)
    val = h_v @ p["w2v"] + p["b2v"]
    return pol, val


def central_vf_ref(obs, opp, p):
    x = jnp.concatenate([obs, opp], axis=-1)
    h1 = jnp.maximum(x @ p["cw1"] + p["cb1"], 0.0)
    h2 = jnp.maximum(h1 @ p["cw2"] + p["cb2"], 0.0)
    return jnp.squeeze(h2 @ p["cw3"] + p["cb3"], axis=-1)


if __name__ == "__main__":
    # Small, deterministic example shapes:
    #   obs_space.shape = (4, 4)  -> obs_size = 16 (obs_flat)
    #   num_outputs     = 4
    #   opponent_action_dim = 4
    batch = 2
    obs_size = 16
    num_outputs = 4
    opp_dim = 4

    key = jax.random.PRNGKey(0)
    k_param, k_x, k_opp = jax.random.split(key, 3)

    params = init_params(k_param, obs_size, num_outputs, opp_dim)
    packed = pack_params(params, obs_size, num_outputs)

    x = jax.random.normal(k_x, (batch, obs_size), jnp.float32)          # input_dict['obs_flat']
    opp_actions = jax.random.normal(k_opp, (batch, opp_dim), jnp.float32)

    # --- separate entry points (mirror the nn.Module API) ---
    policy_out, value_out = forward_pallas(x, packed)                   # forward()
    central_vf = central_value_function_pallas(x, opp_actions, packed)  # central_value_function()
    jax.block_until_ready((policy_out, value_out, central_vf))
    value_fn_out = jnp.squeeze(value_out, axis=-1)                      # value_function()

    pol_ref, val_ref = forward_ref(x, params)
    cvf_ref = central_vf_ref(x, opp_actions, params)
    assert policy_out.shape == (batch, num_outputs)
    assert value_fn_out.shape == (batch,)
    assert central_vf.shape == (batch,)
    assert jnp.allclose(policy_out, pol_ref, atol=1e-5, rtol=1e-5)
    assert jnp.allclose(value_out, val_ref, atol=1e-5, rtol=1e-5)
    assert jnp.allclose(central_vf, cvf_ref, atol=1e-5, rtol=1e-5)

    # --- fused entry point (single pallas_call, obs read from HBM once) ---
    pol_f, val_f, cvf_f = forward_and_central_vf_pallas(x, opp_actions, packed)
    jax.block_until_ready((pol_f, val_f, cvf_f))
    assert jnp.allclose(pol_f, pol_ref, atol=1e-5, rtol=1e-5)
    assert jnp.allclose(val_f, val_ref, atol=1e-5, rtol=1e-5)
    assert jnp.allclose(cvf_f, cvf_ref, atol=1e-5, rtol=1e-5)

    # --- larger batch: exercises the multi-tile "parallel" batch grid (2 tiles of 256)
    big = 512
    kx2, ko2 = jax.random.split(jax.random.PRNGKey(1))
    xb = jax.random.normal(kx2, (big, obs_size), jnp.float32)
    ob = jax.random.normal(ko2, (big, opp_dim), jnp.float32)
    pol_b, val_b, cvf_b = forward_and_central_vf_pallas(xb, ob, packed)
    jax.block_until_ready((pol_b, val_b, cvf_b))
    pol_br, val_br = forward_ref(xb, params)
    cvf_br = central_vf_ref(xb, ob, params)
    assert jnp.allclose(pol_b, pol_br, atol=1e-4, rtol=1e-4)
    assert jnp.allclose(val_b, val_br, atol=1e-4, rtol=1e-4)
    assert jnp.allclose(cvf_b, cvf_br, atol=1e-4, rtol=1e-4)

    print("KERNEL_OK")
</pallas_src>

<mosaic_0001>
module attributes {stable_mosaic.version = 11 : i64} {
  func.func @_forward_kernel(%arg0: i32, %arg1: memref<16x2xf32, #tpu.memory_space<vmem>>, %arg2: memref<256x16xf32, #tpu.memory_space<vmem>>, %arg3: memref<256x1xf32, #tpu.memory_space<vmem>>, %arg4: memref<8x256xf32, #tpu.memory_space<vmem>>, %arg5: memref<8x1xf32, #tpu.memory_space<vmem>>, %arg6: memref<8x2xf32, #tpu.memory_space<vmem>>) attributes {dimension_semantics = [#tpu.dimension_semantics<parallel>], iteration_bounds = array<i64: 1>, scalar_prefetch = 0 : i64, scratch_operands = 0 : i64, tpu.core_type = #tpu.core_type<tc>, window_params = [{transform_indices = @transform_0, window_bounds = array<i64: 16, 2>}, {pipeline_mode = #tpu.pipeline_mode<synchronous>, transform_indices = @transform_1, window_bounds = array<i64: 256, 16>}, {pipeline_mode = #tpu.pipeline_mode<synchronous>, transform_indices = @transform_2, window_bounds = array<i64: 256, 1>}, {pipeline_mode = #tpu.pipeline_mode<synchronous>, transform_indices = @transform_3, window_bounds = array<i64: 8, 256>}, {pipeline_mode = #tpu.pipeline_mode<synchronous>, transform_indices = @transform_4, window_bounds = array<i64: 8, 1>}, {transform_indices = @transform_5, window_bounds = array<i64: 8, 2>}]} {
    %c0 = arith.constant 0 : index
    %c0_0 = arith.constant 0 : index
    %0 = vector.load %arg2[%c0, %c0_0] : memref<256x16xf32, #tpu.memory_space<vmem>>, vector<256x16xf32>
    %c0_1 = arith.constant 0 : index
    %c0_2 = arith.constant 0 : index
    %1 = vector.load %arg1[%c0_1, %c0_2] : memref<16x2xf32, #tpu.memory_space<vmem>>, vector<16x2xf32>
    %cst = arith.constant dense<0.000000e+00> : vector<256x2xf32>
    %2 = tpu.matmul %0, %1, %cst {dimension_numbers = #tpu.dot_dimension_numbers<[1], [0], [0], [1], [0, 0, 1, 1], [], []>} : vector<256x16xf32>, vector<16x2xf32>, vector<256x2xf32> -> vector<256x2xf32>
    %c0_3 = arith.constant 0 : index
    %c0_4 = arith.constant 0 : index
    %3 = vector.load %arg3[%c0_3, %c0_4] : memref<256x1xf32, #tpu.memory_space<vmem>>, vector<256x1xf32>
    %4 = vector.broadcast %3 : vector<256x1xf32> to vector<256x2xf32>
    %5 = arith.addf %2, %4 : vector<256x2xf32>
    %cst_5 = arith.constant 0.000000e+00 : f32
    %6 = vector.broadcast %cst_5 : f32 to vector<256x2xf32>
    %7 = arith.maximumf %5, %6 : vector<256x2xf32>
    %c0_6 = arith.constant 0 : index
    %c0_7 = arith.constant 0 : index
    %8 = vector.load %arg4[%c0_6, %c0_7] : memref<8x256xf32, #tpu.memory_space<vmem>>, vector<8x256xf32>
    %cst_8 = arith.constant dense<0.000000e+00> : vector<8x2xf32>
    %9 = tpu.matmul %8, %7, %cst_8 {dimension_numbers = #tpu.dot_dimension_numbers<[1], [0], [0], [1], [0, 0, 1, 1], [], []>} : vector<8x256xf32>, vector<256x2xf32>, vector<8x2xf32> -> vector<8x2xf32>
    %c0_9 = arith.constant 0 : index
    %c0_10 = arith.constant 0 : index
    %10 = vector.load %arg5[%c0_9, %c0_10] : memref<8x1xf32, #tpu.memory_space<vmem>>, vector<8x1xf32>
    %11 = vector.broadcast %10 : vector<8x1xf32> to vector<8x2xf32>
    %12 = arith.addf %9, %11 : vector<8x2xf32>
    %c0_11 = arith.constant 0 : index
    %c0_12 = arith.constant 0 : index
    %13 = vector.load %arg6[%c0_11, %c0_12] : memref<8x2xf32, #tpu.memory_space<vmem>>, vector<8x2xf32>
    tpu.vector_store %arg6[%c0_11, %c0_12], %12 {strides = array<i32>} : memref<8x2xf32, #tpu.memory_space<vmem>>, vector<8x2xf32>,
    return
  }
  func.func @transform_0(%arg0: i32) -> (i32, i32) {
    %c0_i32 = arith.constant 0 : i32
    %c0_i32_0 = arith.constant 0 : i32
    return %c0_i32, %arg0 : i32, i32
  }
  func.func @transform_1(%arg0: i32) -> (i32, i32) {
    %c0_i32 = arith.constant 0 : i32
    %c0_i32_0 = arith.constant 0 : i32
    %c0_i32_1 = arith.constant 0 : i32
    return %c0_i32, %c0_i32_0 : i32, i32
  }
  func.func @transform_2(%arg0: i32) -> (i32, i32) {
    %c0_i32 = arith.constant 0 : i32
    %c0_i32_0 = arith.constant 0 : i32
    %c0_i32_1 = arith.constant 0 : i32
    return %c0_i32, %c0_i32_0 : i32, i32
  }
  func.func @transform_3(%arg0: i32) -> (i32, i32) {
    %c0_i32 = arith.constant 0 : i32
    %c0_i32_0 = arith.constant 0 : i32
    %c0_i32_1 = arith.constant 0 : i32
    return %c0_i32, %c0_i32_0 : i32, i32
  }
  func.func @transform_4(%arg0: i32) -> (i32, i32) {
    %c0_i32 = arith.constant 0 : i32
    %c0_i32_0 = arith.constant 0 : i32
    %c0_i32_1 = arith.constant 0 : i32
    return %c0_i32, %c0_i32_0 : i32, i32
  }
  func.func @transform_5(%arg0: i32) -> (i32, i32) {
    %c0_i32 = arith.constant 0 : i32
    %c0_i32_0 = arith.constant 0 : i32
    return %c0_i32, %arg0 : i32, i32
  }
}

</mosaic_0001>

<bundles_post_ra>
// kernel: tpu_custom_call.1
= control target key start
LH: loop header
LB: loop body
LE: loop exit
PB: predicated region body
PF: predicated region fallthrough
CT: control target
= control target key end

     0   :  { %vm246_vm0 = vcmask 130048   ;;  %v876_v3 = vmov 0   ;;  %vm678_vm1 = vcmask 15360   ;;  %s1221_s0 = inlined_call_operand.vmem [shape: f32[16,2], index: 0, kind: input, shape index: {}]   ;;  %s1222_s1 = inlined_call_operand.vmem [shape: f32[256,16], index: 1, kind: input, shape index: {}]   ;;  %s1223_s2 = inlined_call_operand.vmem [shape: f32[256,1], index: 2, kind: input, shape index: {}]   ;;  %s1224_s4 = inlined_call_operand.vmem [shape: f32[8,1], index: 4, kind: input, shape index: {}]   ;;  %s1225_s3 = inlined_call_operand.vmem [shape: f32[8,256], index: 3, kind: input, shape index: {}]   ;;  %s1226_s5 = inlined_call_operand.vmem [shape: f32[8,2], index: 5, kind: output, shape index: {}]  }
   0x1   :  { %v52_v0 = vld [vmem:[%s1221_s0] sm:$0xff]  ;;  %v53_v1 = vld [vmem:[%s1221_s0 + $0x8] sm:$0xff]  ;;  %874 = vset.pattern.permute.xlu0 %v876_v3  ;;  %875 = vset.pattern.permute.xlu1 %v876_v3  ;;  %v22_v7 = vld [vmem:[%s1222_s1 + $0x10] sm:$0xff] }
   0x2   :  { %v20_v2 = vld [vmem:[%s1222_s1] sm:$0xff]  ;;  %v837_v4 = vpack.c.bf16 %v53_v1, %v52_v0  ;;  %v21_v5 = vld [vmem:[%s1222_s1 + $0x8] sm:$0xff]  ;;  %v23_v10 = vld [vmem:[%s1222_s1 + $0x18] sm:$0xff] }
   0x3   :  { %789 = vmatprep.mubr.msk.f32.mxu0 %vm246_vm0, %v20_v2  ;;  %v70_v6 = vld [vmem:[%s1223_s2 + $0x80] sm:$0xff]  ;;  %v71_v8 = vld [vmem:[%s1223_s2 + $0x88] sm:$0xff]  ;;  %v72_v13 = vld [vmem:[%s1223_s2 + $0x90] sm:$0xff] }
   0x4   :  { %838 = vmatprep.subr.bf16.mxu0 %v837_v4  ;;  %168 = vperm.xlu0 %874, %v70_v6   ;;  %v54_v9 = vld [vmem:[%s1223_s2] sm:$0xff]  ;;  %v55_v11 = vld [vmem:[%s1223_s2 + $0x8] sm:$0xff]  ;;  %v73_v15 = vld [vmem:[%s1223_s2 + $0x98] sm:$0xff] }
   0x5   :  { %840 = vmatpush3.bf16.msra.mxu0 %v837_v4  ;;  %88 = vperm.xlu1 %875, %v54_v9   ;;  %v24_v12 = vld [vmem:[%s1222_s1 + $0x20] sm:$0xff]  ;;  %v25_v14 = vld [vmem:[%s1222_s1 + $0x28] sm:$0xff]  ;;  %v26_v16 = vld [vmem:[%s1222_s1 + $0x30] sm:$0xff] }
   0x6   :  { %v56_v17 = vld [vmem:[%s1223_s2 + $0x10] sm:$0xff]  ;;  %v27_v18 = vld [vmem:[%s1222_s1 + $0x38] sm:$0xff]  ;;  %v28_v20 = vld [vmem:[%s1222_s1 + $0x40] sm:$0xff] }
   0x7   :  { %v57_v19 = vld [vmem:[%s1223_s2 + $0x18] sm:$0xff]  ;;  %v74_v21 = vld [vmem:[%s1223_s2 + $0xa0] sm:$0xff]  ;;  %v29_v22 = vld [vmem:[%s1222_s1 + $0x48] sm:$0xff] }
   0x8   :  { %790 = vmatmul.mubr.msk.f32.vlgmr.msra.gmra.mrb[0].mxu0 %vm246_vm0, %v21_v5  ;;  %173 = vperm.xlu0 %874, %v71_v8   ;;  %v75_v23 = vld [vmem:[%s1223_s2 + $0xa8] sm:$0xff]  ;;  %v30_v24 = vld [vmem:[%s1222_s1 + $0x50] sm:$0xff]  ;;  %v58_v25 = vld [vmem:[%s1223_s2 + $0x20] sm:$0xff] }
   0x9   :  { %792 = vmatprep.mubr.msk.f32.mxu0 %vm246_vm0, %v22_v7  ;;  %93 = vperm.xlu1 %875, %v55_v11   ;;  %v31_v26 = vld [vmem:[%s1222_s1 + $0x58] sm:$0xff]  ;;  %v59_v27 = vld [vmem:[%s1223_s2 + $0x28] sm:$0xff]  ;;  %v32_v28 = vld [vmem:[%s1222_s1 + $0x60] sm:$0xff] }
   0xa   :  { %v76_v29 = vld [vmem:[%s1223_s2 + $0xb0] sm:$0xff]  ;;  %v33_v30 = vld [vmem:[%s1222_s1 + $0x68] sm:$0xff]  ;;  %v77_v31 = vld [vmem:[%s1223_s2 + $0xb8] sm:$0xff] }
   0xb   :  { %v34_v32 = vld [vmem:[%s1222_s1 + $0x70] sm:$0xff]  ;;  %v35_v34 = vld [vmem:[%s1222_s1 + $0x78] sm:$0xff]  ;;  %v36_v36 = vld [vmem:[%s1222_s1 + $0x80] sm:$0xff] }
   0xc   :  { %793 = vmatmul.mubr.msk.f32.gmra.mrb[2].mxu0 %vm246_vm0, %v23_v10  ;;  %178 = vperm.xlu0 %874, %v72_v13   ;;  %v60_v33 = vld [vmem:[%s1223_s2 + $0x30] sm:$0xff]  ;;  %v61_v35 = vld [vmem:[%s1223_s2 + $0x38] sm:$0xff]  ;;  %v78_v37 = vld [vmem:[%s1223_s2 + $0xc0] sm:$0xff] }
   0xd   :  { %795 = vmatprep.mubr.msk.f32.mxu0 %vm246_vm0, %v24_v12  ;;  %183 = vperm.xlu1 %875, %v73_v15   ;;  %v37_v38 = vld [vmem:[%s1222_s1 + $0x88] sm:$0xff]  ;;  %v38_v40 = vld [vmem:[%s1222_s1 + $0x90] sm:$0xff]  ;;  %v62_v41 = vld [vmem:[%s1223_s2 + $0x40] sm:$0xff] }
   0xe   :  { %v79_v39 = vld [vmem:[%s1223_s2 + $0xc8] sm:$0xff]  ;;  %v39_v42 = vld [vmem:[%s1222_s1 + $0x98] sm:$0xff]  ;;  %v40_v44 = vld [vmem:[%s1222_s1 + $0xa0] sm:$0xff] }
   0xf   :  { %v63_v43 = vld [vmem:[%s1223_s2 + $0x48] sm:$0xff]  ;;  %v80_v45 = vld [vmem:[%s1223_s2 + $0xd0] sm:$0xff]  ;;  %v81_v47 = vld [vmem:[%s1223_s2 + $0xd8] sm:$0xff] }
  0x10   :  { %796 = vmatmul.mubr.msk.f32.gmra.mrb[4].mxu0 %vm246_vm0, %v25_v14  ;;  %98 = vperm.xlu0 %874, %v56_v17   ;;  %v41_v46 = vld [vmem:[%s1222_s1 + $0xa8] sm:$0xff]  ;;  %v42_v48 = vld [vmem:[%s1222_s1 + $0xb0] sm:$0xff]  ;;  %v43_v50 = vld [vmem:[%s1222_s1 + $0xb8] sm:$0xff] }
  0x11   :  { %798 = vmatprep.mubr.msk.f32.mxu0 %vm246_vm0, %v26_v16  ;;  %103 = vperm.xlu1 %875, %v57_v19   ;;  %v64_v49 = vld [vmem:[%s1223_s2 + $0x50] sm:$0xff]  ;;  %v65_v51 = vld [vmem:[%s1223_s2 + $0x58] sm:$0xff]  ;;  %v44_v52 = vld [vmem:[%s1222_s1 + $0xc0] sm:$0xff] }
  0x12   :  { %v82_v53 = vld [vmem:[%s1223_s2 + $0xe0] sm:$0xff]  ;;  %v45_v54 = vld [vmem:[%s1222_s1 + $0xc8] sm:$0xff]  ;;  %v46_v56 = vld [vmem:[%s1222_s1 + $0xd0] sm:$0xff] }
  0x13   :  { %v83_v55 = vld [vmem:[%s1223_s2 + $0xe8] sm:$0xff]  ;;  %v66_v57 = vld [vmem:[%s1223_s2 + $0x60] sm:$0xff]  ;;  %v47_v58 = vld [vmem:[%s1222_s1 + $0xd8] sm:$0xff] }
  0x14   :  { %799 = vmatmul.mubr.msk.f32.gmra.mrb[6].mxu0 %vm246_vm0, %v27_v18  ;;  %188 = vperm.xlu0 %874, %v74_v21   ;;  %v67_v59 = vld [vmem:[%s1223_s2 + $0x68] sm:$0xff]  ;;  %v48_v60 = vld [vmem:[%s1222_s1 + $0xe0] sm:$0xff]  ;;  %v84_v61 = vld [vmem:[%s1223_s2 + $0xf0] sm:$0xff] }
  0x15   :  { %801 = vmatprep.mubr.msk.f32.mxu0 %vm246_vm0, %v28_v20  ;;  %193 = vperm.xlu1 %875, %v75_v23   ;;  %v49_v62 = vld [vmem:[%s1222_s1 + $0xe8] sm:$0xff]  ;;  %v85_v63 = vld [vmem:[%s1223_s2 + $0xf8] sm:$0xff]  ;;  %v50_v0 = vld [vmem:[%s1222_s1 + $0xf0] sm:$0xff] }
  0x16   :  { %v68_v1 = vld [vmem:[%s1223_s2 + $0x70] sm:$0xff]  ;;  %v51_v2 = vld [vmem:[%s1222_s1 + $0xf8] sm:$0xff]  ;;  %v602_v4 = vld [vmem:[%s1224_s4] sm:$0xff] }
  0x17   :  { %v69_v3 = vld [vmem:[%s1223_s2 + $0x78] sm:$0xff]  ;;  %v601_v7 = vld [vmem:[%s1225_s3 + $0x8] sm:$0xff] }
  0x18   :  { %802 = vmatmul.mubr.msk.f32.gmra.mrb[8].mxu0 %vm246_vm0, %v29_v22  ;;  %108 = vperm.xlu0 %874, %v58_v25  }
  0x19   :  { %804 = vmatprep.mubr.msk.f32.mxu0 %vm246_vm0, %v30_v24  ;;  %113 = vperm.xlu1 %875, %v59_v27  }
  0x1a   :  { %672 = vmatprep.mubr.f32.mxu1 %v601_v7 }
  0x1c   :  { %805 = vmatmul.mubr.msk.f32.gmra.mrb[10].mxu0 %vm246_vm0, %v31_v26  ;;  %198 = vperm.xlu0 %874, %v76_v29  }
  0x1d   :  { %807 = vmatprep.mubr.msk.f32.mxu0 %vm246_vm0, %v32_v28  ;;  %203 = vperm.xlu1 %875, %v77_v31  }
  0x20   :  { %808 = vmatmul.mubr.msk.f32.gmra.mrb[12].mxu0 %vm246_vm0, %v33_v30  ;;  %118 = vperm.xlu0 %874, %v60_v33  }
  0x21   :  { %810 = vmatprep.mubr.msk.f32.mxu0 %vm246_vm0, %v34_v32  ;;  %123 = vperm.xlu1 %875, %v61_v35  }
  0x24   :  { %811 = vmatmul.mubr.msk.f32.gmra.mrb[14].mxu0 %vm246_vm0, %v35_v34  ;;  %208 = vperm.xlu0 %874, %v78_v37  }
  0x25   :  { %813 = vmatprep.mubr.msk.f32.mxu0 %vm246_vm0, %v36_v36  ;;  %213 = vperm.xlu1 %875, %v79_v39  }
  0x28   :  { %814 = vmatmul.mubr.msk.f32.gmra.mrb[16].mxu0 %vm246_vm0, %v37_v38  ;;  %128 = vperm.xlu0 %874, %v62_v41  }
  0x29   :  { %816 = vmatprep.mubr.msk.f32.mxu0 %vm246_vm0, %v38_v40  ;;  %133 = vperm.xlu1 %875, %v63_v43  }
  0x2c   :  { %817 = vmatmul.mubr.msk.f32.gmra.mrb[18].mxu0 %vm246_vm0, %v39_v42  ;;  %218 = vperm.xlu0 %874, %v80_v45  }
  0x2d   :  { %819 = vmatprep.mubr.msk.f32.mxu0 %vm246_vm0, %v40_v44  ;;  %223 = vperm.xlu1 %875, %v81_v47  }
  0x30   :  { %820 = vmatmul.mubr.msk.f32.gmra.mrb[20].mxu0 %vm246_vm0, %v41_v46  ;;  %138 = vperm.xlu0 %874, %v64_v49  }
  0x31   :  { %822 = vmatprep.mubr.msk.f32.mxu0 %vm246_vm0, %v42_v48  ;;  %143 = vperm.xlu1 %875, %v65_v51  }
  0x34   :  { %823 = vmatmul.mubr.msk.f32.gmra.mrb[22].mxu0 %vm246_vm0, %v43_v50  ;;  %228 = vperm.xlu0 %874, %v82_v53  }
  0x35   :  { %825 = vmatprep.mubr.msk.f32.mxu0 %vm246_vm0, %v44_v52  ;;  %233 = vperm.xlu1 %875, %v83_v55  }
  0x38   :  { %826 = vmatmul.mubr.msk.f32.gmra.mrb[24].mxu0 %vm246_vm0, %v45_v54  ;;  %148 = vperm.xlu0 %874, %v66_v57  }
  0x39   :  { %828 = vmatprep.mubr.msk.f32.mxu0 %vm246_vm0, %v46_v56  ;;  %153 = vperm.xlu1 %875, %v67_v59  }
  0x3c   :  { %829 = vmatmul.mubr.msk.f32.gmra.mrb[26].mxu0 %vm246_vm0, %v47_v58  ;;  %238 = vperm.xlu0 %874, %v84_v61  }
  0x3d   :  { %831 = vmatprep.mubr.msk.f32.mxu0 %vm246_vm0, %v48_v60  ;;  %243 = vperm.xlu1 %875, %v85_v63  }
  0x40   :  { %832 = vmatmul.mubr.msk.f32.gmra.mrb[28].mxu0 %vm246_vm0, %v49_v62  ;;  %158 = vperm.xlu0 %874, %v68_v1  }
  0x41   :  { %834 = vmatprep.mubr.msk.f32.mxu0 %vm246_vm0, %v50_v0  ;;  %163 = vperm.xlu1 %875, %v69_v3  }
  0x44   :  { %835 = vmatmul.mubr.msk.f32.gmra.mrb[30].mxu0 %vm246_vm0, %v51_v2  ;;  %605 = vperm.xlu0 %874, %v602_v4  }
  0x83   :  { %v1140_v6 = vpop.permute.xlu0 %168 }
  0x84   :  { %v89_v5 = vpop.permute.xlu1 %88 }
  0x87   :  { %v1145_v9 = vpop.permute.xlu0 %173 }
  0x88   :  { %v94_v8 = vpop.permute.xlu1 %93 }
  0x8b   :  { %v1149_v11 = vpop.permute.xlu0 %178 }
  0x8c   :  { %v1147_v10 = vpop.permute.xlu1 %183 }
  0x8f   :  { %v99_v13 = vpop.permute.xlu0 %98 }
  0x90   :  { %v104_v12 = vpop.permute.xlu1 %103 }
  0x93   :  { %v1153_v15 = vpop.permute.xlu0 %188 }
  0x94   :  { %v1151_v14 = vpop.permute.xlu1 %193 }
  0x97   :  { %v109_v17 = vpop.permute.xlu0 %108 }
  0x98   :  { %v114_v16 = vpop.permute.xlu1 %113 }
  0x9b   :  { %v1157_v19 = vpop.permute.xlu0 %198 }
  0x9c   :  { %v1155_v18 = vpop.permute.xlu1 %203 }
  0x9f   :  { %v119_v21 = vpop.permute.xlu0 %118 }
  0xa0   :  { %v124_v20 = vpop.permute.xlu1 %123 }
  0xa3   :  { %v1161_v23 = vpop.permute.xlu0 %208 }
  0xa4   :  { %v1159_v22 = vpop.permute.xlu1 %213 }
  0xa7   :  { %v129_v25 = vpop.permute.xlu0 %128 }
  0xa8   :  { %v134_v24 = vpop.permute.xlu1 %133 }
  0xab   :  { %v1165_v27 = vpop.permute.xlu0 %218 }
  0xac   :  { %v1163_v26 = vpop.permute.xlu1 %223 }
  0xaf   :  { %v139_v36 = vpop.permute.xlu0 %138 }
  0xb0   :  { %v144_v33 = vpop.permute.xlu1 %143 }
  0xb3   :  { %v1173_v49 = vpop.permute.xlu0 %228 }
  0xb4   :  { %v1169_v46 = vpop.permute.xlu1 %233 }
  0xb7   :  { %v149_v61 = vpop.permute.xlu0 %148 }
  0xb8   :  { %v154_v58 = vpop.permute.xlu1 %153 }
  0xdb   :  { %v791_v28 = vpop.f32.mrb[0].mxu0 }
  0xdc   :  { %v415_v29 = vadd.f32 %v791_v28, %v94_v8  ;;  %v409_v30 = vpop.f32.mrb[1].mxu0  ;;  %v1179_v8 = vpop.permute.xlu1 %243 }
  0xdd   :  { %v410_v31 = vadd.f32 %v409_v30, %v89_v5 }
  0xde   :  { %v569_v32 = vmax.f32 %v415_v29, 0.0 }
  0xdf   :  { %v568_v34 = vmax.f32 %v410_v31, 0.0  ;;  %v794_v35 = vpop.f32.mrb[2].mxu0 }
  0xe0   :  { %v425_v37 = vadd.f32 %v794_v35, %v104_v12  ;;  %v419_v38 = vpop.f32.mrb[3].mxu0  ;;  %v164_v31 = vpop.permute.xlu1 %163 }
  0xe1   :  { %v420_v39 = vadd.f32 %v419_v38, %v99_v13  ;;  %v1167_v40 = vpack.c.bf16 %v569_v32, %v568_v34 }
  0xe2   :  { %v571_v41 = vmax.f32 %v425_v37, 0.0 }
  0xe3   :  { %v570_v42 = vmax.f32 %v420_v39, 0.0  ;;  %v797_v43 = vpop.f32.mrb[4].mxu0 }
  0xe4   :  { %v435_v44 = vadd.f32 %v797_v43, %v114_v16  ;;  %v429_v45 = vpop.f32.mrb[5].mxu0  ;;  %v1183_v16 = vpop.permute.xlu0 %238 }
  0xe5   :  { %v1171_v47 = vpack.c.bf16 %v571_v41, %v570_v42  ;;  %v430_v48 = vadd.f32 %v429_v45, %v109_v17 }
  0xe6   :  { %v573_v50 = vmax.f32 %v435_v44, 0.0 }
  0xe7   :  { %v572_v51 = vmax.f32 %v430_v48, 0.0  ;;  %v800_v52 = vpop.f32.mrb[6].mxu0 }
  0xe8   :  { %v445_v53 = vadd.f32 %v800_v52, %v124_v20  ;;  %v439_v54 = vpop.f32.mrb[7].mxu0  ;;  %v159_v34 = vpop.permute.xlu0 %158 }
  0xe9   :  { %v1175_v55 = vpack.c.bf16 %v573_v50, %v572_v51  ;;  %v440_v56 = vadd.f32 %v439_v54, %v119_v21 }
  0xea   :  { %v575_v57 = vmax.f32 %v445_v53, 0.0 }
  0xeb   :  { %v574_v59 = vmax.f32 %v440_v56, 0.0  ;;  %v803_v60 = vpop.f32.mrb[8].mxu0 }
  0xec   :  { %v455_v62 = vadd.f32 %v803_v60, %v134_v24  ;;  %v449_v63 = vpop.f32.mrb[9].mxu0 }
  0xed   :  { %v1177_v0 = vpack.c.bf16 %v575_v57, %v574_v59  ;;  %v450_v1 = vadd.f32 %v449_v63, %v129_v25 }
  0xee   :  { %v577_v2 = vmax.f32 %v455_v62, 0.0 }
  0xef   :  { %v576_v3 = vmax.f32 %v450_v1, 0.0  ;;  %v806_v4 = vpop.f32.mrb[10].mxu0 }
  0xf0   :  { %v465_v5 = vadd.f32 %v806_v4, %v144_v33  ;;  %v459_v7 = vpop.f32.mrb[11].mxu0 }
  0xf1   :  { %v1181_v12 = vpack.c.bf16 %v577_v2, %v576_v3  ;;  %v460_v13 = vadd.f32 %v459_v7, %v139_v36 }
  0xf2   :  { %v579_v17 = vmax.f32 %v465_v5, 0.0 }
  0xf3   :  { %v578_v20 = vmax.f32 %v460_v13, 0.0  ;;  %v809_v21 = vpop.f32.mrb[12].mxu0 }
  0xf4   :  { %v475_v24 = vadd.f32 %v809_v21, %v154_v58  ;;  %v469_v28 = vpop.f32.mrb[13].mxu0 }
  0xf5   :  { %v1185_v29 = vpack.c.bf16 %v579_v17, %v578_v20  ;;  %v470_v25 = vadd.f32 %v469_v28, %v149_v61 }
  0xf6   :  { %v581_v30 = vmax.f32 %v475_v24, 0.0 }
  0xf7   :  { %v580_v32 = vmax.f32 %v470_v25, 0.0  ;;  %v812_v33 = vpop.f32.mrb[14].mxu0 }
  0xf8   :  { %v485_v35 = vadd.f32 %v812_v33, %v164_v31  ;;  %v479_v37 = vpop.f32.mrb[15].mxu0 }
  0xf9   :  { %v1187_v38 = vpack.c.bf16 %v581_v30, %v580_v32  ;;  %v480_v36 = vadd.f32 %v479_v37, %v159_v34 }
  0xfa   :  { %v583_v39 = vmax.f32 %v485_v35, 0.0 }
  0xfb   :  { %v582_v41 = vmax.f32 %v480_v36, 0.0  ;;  %v815_v42 = vpop.f32.mrb[16].mxu0 }
  0xfc   :  { %v495_v43 = vadd.f32 %v815_v42, %v1145_v9  ;;  %v489_v44 = vpop.f32.mrb[17].mxu0 }
  0xfd   :  { %v1190_v45 = vpack.c.bf16 %v583_v39, %v582_v41  ;;  %v490_v48 = vadd.f32 %v489_v44, %v1140_v6  ;;  %v606_v41 = vpop.permute.xlu0 %605 }
  0xfe   :  { %v585_v50 = vmax.f32 %v495_v43, 0.0 }
  0xff   :  { %v584_v51 = vmax.f32 %v490_v48, 0.0  ;;  %v818_v52 = vpop.f32.mrb[18].mxu0 }
 0x100   :  { %v505_v53 = vadd.f32 %v818_v52, %v1147_v10  ;;  %v499_v54 = vpop.f32.mrb[19].mxu0 }
 0x101   :  { %v500_v56 = vadd.f32 %v499_v54, %v1149_v11  ;;  %v841_v57 = vpack.c.bf16 %v585_v50, %v584_v51 }
 0x102   :  { %v587_v58 = vmax.f32 %v505_v53, 0.0 }
 0x103   :  { %v586_v59 = vmax.f32 %v500_v56, 0.0  ;;  %v821_v60 = vpop.f32.mrb[20].mxu0  ;;  %842 = vmatprep.subr.bf16.mxu1 %v841_v57 }
 0x104   :  { %v515_v9 = vadd.f32 %v821_v60, %v1151_v14  ;;  %v509_v61 = vpop.f32.mrb[21].mxu0  ;;  %844 = vmatpush3.bf16.msra.mxu1 %v1167_v40 }
 0x105   :  { %v845_v62 = vpack.c.bf16 %v587_v58, %v586_v59  ;;  %v510_v6 = vadd.f32 %v509_v61, %v1153_v15 }
 0x106   :  { %v589_v63 = vmax.f32 %v515_v9, 0.0 }
 0x107   :  { %v588_v1 = vmax.f32 %v510_v6, 0.0  ;;  %v824_v2 = vpop.f32.mrb[22].mxu0  ;;  %846 = vmatprep.subr.bf16.mxu1 %v845_v62 }
 0x108   :  { %v525_v10 = vadd.f32 %v824_v2, %v1155_v18  ;;  %v519_v11 = vpop.f32.mrb[23].mxu0  ;;  %848 = vmatpush3.bf16.msra.mxu1 %v1171_v47 }
 0x109   :  { %v849_v3 = vpack.c.bf16 %v589_v63, %v588_v1  ;;  %v520_v4 = vadd.f32 %v519_v11, %v1157_v19 }
 0x10a   :  { %v591_v5 = vmax.f32 %v525_v10, 0.0 }
 0x10b   :  { %v590_v14 = vmax.f32 %v520_v4, 0.0  ;;  %v827_v7 = vpop.f32.mrb[24].mxu0  ;;  %850 = vmatprep.subr.bf16.mxu1 %v849_v3 }
 0x10c   :  { %v535_v40 = vadd.f32 %v827_v7, %v1159_v22  ;;  %v529_v13 = vpop.f32.mrb[25].mxu0  ;;  %852 = vmatpush3.bf16.msra.mxu1 %v1175_v55 }
 0x10d   :  { %v853_v15 = vpack.c.bf16 %v591_v5, %v590_v14  ;;  %v530_v17 = vadd.f32 %v529_v13, %v1161_v23 }
 0x10e   :  { %v593_v20 = vmax.f32 %v535_v40, 0.0 }
 0x10f   :  { %v592_v18 = vmax.f32 %v530_v17, 0.0  ;;  %v830_v21 = vpop.f32.mrb[26].mxu0  ;;  %854 = vmatprep.subr.bf16.mxu1 %v853_v15 }
 0x110   :  { %v545_v47 = vadd.f32 %v830_v21, %v1163_v26  ;;  %v539_v24 = vpop.f32.mrb[27].mxu0  ;;  %856 = vmatpush3.bf16.msra.mxu1 %v1177_v0 }
 0x111   :  { %v857_v19 = vpack.c.bf16 %v593_v20, %v592_v18  ;;  %v540_v28 = vadd.f32 %v539_v24, %v1165_v27 }
 0x112   :  { %v595_v25 = vmax.f32 %v545_v47, 0.0 }
 0x113   :  { %v594_v22 = vmax.f32 %v540_v28, 0.0  ;;  %v833_v30 = vpop.f32.mrb[28].mxu0  ;;  %858 = vmatprep.subr.bf16.mxu1 %v857_v19 }
 0x114   :  { %v555_v55 = vadd.f32 %v833_v30, %v1169_v46  ;;  %v549_v31 = vpop.f32.mrb[29].mxu0  ;;  %860 = vmatpush3.bf16.msra.mxu1 %v1181_v12 }
 0x115   :  { %v861_v23 = vpack.c.bf16 %v595_v25, %v594_v22  ;;  %v550_v32 = vadd.f32 %v549_v31, %v1173_v49  ;;  %v600_v49 = vld [vmem:[%s1225_s3] sm:$0xff] }
 0x116   :  { %v597_v33 = vmax.f32 %v555_v55, 0.0 }
 0x117   :  { %v596_v26 = vmax.f32 %v550_v32, 0.0  ;;  %v836_v34 = vpop.f32.mrb[30].mxu0  ;;  %862 = vmatprep.subr.bf16.mxu1 %v861_v23 }
 0x118   :  { %v565_v0 = vadd.f32 %v836_v34, %v1179_v8  ;;  %v559_v35 = vpop.f32.mrb[31].mxu0  ;;  %864 = vmatpush3.bf16.msra.mxu1 %v1185_v29 }
 0x119   :  { %v865_v27 = vpack.c.bf16 %v597_v33, %v596_v26  ;;  %v560_v37 = vadd.f32 %v559_v35, %v1183_v16 }
 0x11a   :  { %v599_v36 = vmax.f32 %v565_v0, 0.0 }
 0x11b   :  { %v598_v46 = vmax.f32 %v560_v37, 0.0  ;;  %866 = vmatprep.subr.bf16.mxu1 %v865_v27 }
 0x11c   :  { %868 = vmatpush3.bf16.msra.mxu1 %v1187_v38 }
 0x11d   :  { %v869_v12 = vpack.c.bf16 %v599_v36, %v598_v46 }
 0x11f   :  { %870 = vmatprep.subr.bf16.mxu1 %v869_v12 }
 0x120   :  { %872 = vmatpush3.bf16.msra.mxu1 %v1190_v45 }
 0x123   :  { %673 = vmatmul.mubr.f32.vlgmr.msra.gmra.mrb[0].mxu1 %v600_v49 }
 0x1f6   :  { %v782_v8 = vpop.f32.mrb[0].mxu1 }
 0x1f7   :  { %v783_v39 = vpop.f32.mrb[1].mxu1 }
 0x1f8   :  { %v784_v29 = vadd.f32 %v783_v39, %v782_v8 }
 0x1fa   :  { %v675_v16 = vadd.f32 %v784_v29, %v606_v41 }
 0x1fc   :  { %679 = vst.msk [vmem:[%s1226_s5] sm:$0xff] %vm678_vm1, %v675_v16 }

</bundles_post_ra>
